<compile_context>
chip_gen: v7x
topology: tpu7x:2x2x1
jax: 0.10.0
libtpu: 0.0.40
codegen_flags: <defaults>
</compile_context>

<pallas_src>
import functools
import math

import jax
import jax.numpy as jnp
from jax import lax
from jax.experimental import pallas as pl
from jax.experimental.pallas import tpu as pltpu


def _gate_kernel(x_ref, w_ref, b_ref, out_ref, acc_ref, *, inv_seq_len):
    # x_ref:  (tb, tt, Dg)   w_ref: (E, Dg) (PyTorch layout, tiled g times)
    # b_ref:  (1, E)         out_ref: (tb, E)   acc_ref: (tb, Dg) f32 scratch
    t = pl.program_id(1)

    @pl.when(t == 0)
    def _init():
        acc_ref[...] = jnp.zeros_like(acc_ref)

    # Partial sum over this seq tile; always accumulate in f32 (bf16-x safe).
    acc_ref[...] += jnp.sum(x_ref[...].astype(jnp.float32), axis=1)

    @pl.when(t == pl.num_programs(1) - 1)
    def _finalize():
        # logits = (sum_T x / T) @ W^T + b, contracting on the (tiled) D axis.
        logits = lax.dot_general(
            acc_ref[...], w_ref[...].astype(jnp.float32),
            dimension_numbers=(((1,), (1,)), ((), ())),
            preferred_element_type=jnp.float32)                 # (tb, E)
        logits = logits * inv_seq_len + b_ref[...].astype(jnp.float32)

        # Numerically-stable softmax over experts; exact divide (runs once per
        # batch block, so the precise reciprocal is free in wall-clock terms).
        m = jnp.max(logits, axis=-1, keepdims=True)
        e = jnp.exp(logits - m)
        denom = jnp.sum(e, axis=-1, keepdims=True)
        out_ref[...] = (e / denom).astype(out_ref.dtype)


def _pad_to(n, m):
    return -(-n // m) * m


def _largest_aligned_divisor(total, cap, align):
    """Largest divisor of `total` that is a multiple of `align` and <= cap."""
    cap = min(cap, total)
    for cand in range(cap, align - 1, -1):
        if cand % align == 0 and total % cand == 0:
            return cand
    return None


def gate_network(x, weight, bias, *, tb=None, tt=None):
    """x: (B, T, D); weight: (E, D) (PyTorch layout); bias: (E,). Returns (B, E) f32."""
    B, T, D = x.shape
    E = weight.shape[0]
    orig_T = T
    itemsize = jnp.dtype(x.dtype).itemsize
    # Dtype-aware sublane alignment for the (second-to-last) seq tile dim.
    sub = {4: 8, 2: 16, 1: 32}.get(itemsize, 8)

    # ---- Lane densification: group g seq steps so the last dim is 128-dense.
    g = 1
    if D % 128 != 0:
        cand_g = math.lcm(D, 128) // D
        if cand_g <= T and T % cand_g == 0:
            g = cand_g
    Dg = g * D
    S = T // g
    x_r = x.reshape(B, S, Dg) if g > 1 else x        # free row-major view
    w_t = jnp.tile(weight, (1, g)) if g > 1 else weight   # (E, Dg), tiny
    b2 = bias.reshape(1, E)
    w_itemsize = jnp.dtype(w_t.dtype).itemsize

    # ---- VMEM capacity (adapts to v5e/v6e 128 MiB vs v7x 64 MiB).
    try:
        info = pltpu.get_tpu_info()
        vmem_cap = int(getattr(info, "vmem_capacity_bytes", 64 * 1024 * 1024))
    except Exception:
        vmem_cap = 64 * 1024 * 1024                 # conservative (v7x)
    vmem_limit = max(32 * 1024 * 1024,
                     min(int(0.65 * vmem_cap), 96 * 1024 * 1024))

    # ---- Batch tile: keep the "parallel" axis extent >= 2 so both v7x cores work.
    if tb is None:
        cap_tb = 256
        if B >= 16:
            cap_tb = min(cap_tb, B // 2)
        tb = _largest_aligned_divisor(B, cap_tb, 8)
        if tb is None:
            tb = B                                   # full extent (always legal)
    assert B % tb == 0, "tb must divide B"

    # ---- Resident VMEM (with lane/sublane padding): weight x2, bias, out x2, acc.
    resident = (
        2 * _pad_to(E, 8) * _pad_to(Dg, 128) * w_itemsize    # weight blocks
        + 2 * 8 * 128 * 4                                    # bias block
        + 2 * _pad_to(tb, 8) * _pad_to(E, 128) * 4           # out blocks (f32)
        + _pad_to(tb, 8) * _pad_to(Dg, 128) * 4              # acc scratch (f32)
    )
    # Budget per x double-buffer copy, with headroom for internal scratch.
    x_budget = max(512 * 1024, (vmem_limit - resident - 4 * 1024 * 1024) // 2)

    # ---- Seq tile (on the grouped axis S), sized to the per-buffer budget.
    if tt is None:
        row_bytes = tb * _pad_to(Dg, 128) * itemsize
        tt_cap = max(sub, x_budget // max(1, row_bytes))
        tt_sel = _largest_aligned_divisor(S, tt_cap, sub)
        if tt_sel is None:
            full_bytes = tb * _pad_to(S, sub) * _pad_to(Dg, 128) * itemsize
            if full_bytes <= x_budget:
                tt_sel = S                            # full extent, fits budget
            else:
                # Zero-pad the grouped seq axis so an aligned tile divides it
                # (zeros don't change the sum; mean divides by the original T).
                tt_sel = max(sub, (min(tt_cap, S) // sub) * sub)
                s_pad = _pad_to(S, tt_sel)
                x_r = jnp.pad(x_r, ((0, 0), (0, s_pad - S), (0, 0)))
                S = s_pad
        tt = tt_sel
    assert S % tt == 0, "tt must divide the grouped sequence length"

    kernel = functools.partial(_gate_kernel, inv_seq_len=1.0 / float(orig_T))

    return pl.pallas_call(
        kernel,
        out_shape=jax.ShapeDtypeStruct((B, E), jnp.float32),
        grid_spec=pltpu.PrefetchScalarGridSpec(
            num_scalar_prefetch=0,
            grid=(B // tb, S // tt),
            in_specs=[
                pl.BlockSpec((tb, tt, Dg), lambda b, t: (b, t, 0)),   # x tiles
                pl.BlockSpec((E, Dg), lambda b, t: (0, 0)),           # weight (resident)
                pl.BlockSpec((1, E), lambda b, t: (0, 0)),            # bias   (resident)
            ],
            # Same block index across the seq axis -> output resident (accumulator).
            out_specs=pl.BlockSpec((tb, E), lambda b, t: (b, 0)),
            scratch_shapes=[pltpu.VMEM((tb, Dg), jnp.float32)],
        ),
        compiler_params=pltpu.CompilerParams(
            dimension_semantics=("parallel", "arbitrary"),
            vmem_limit_bytes=vmem_limit,
        ),
    )(x_r, w_t, b2)


def _reference(x, weight, bias):
    x_avg = jnp.mean(x, axis=1)
    logits = x_avg @ weight.T + bias
    return jax.nn.softmax(logits, axis=1)


if __name__ == "__main__":
    key = jax.random.PRNGKey(0)
    kx, kw, kb, kx2 = jax.random.split(key, 4)

    B, T, D, E = 16, 16, 32, 2          # batch, seq, input_dim, num_experts
    x = jax.random.normal(kx, (B, T, D), dtype=jnp.float32)
    bound = 1.0 / (D ** 0.5)
    weight = jax.random.uniform(kw, (E, D), minval=-bound, maxval=bound,
                                dtype=jnp.float32)
    bias = jax.random.uniform(kb, (E,), minval=-bound, maxval=bound,
                              dtype=jnp.float32)

    # 1) Auto-sized tiles (exercises lane densification: D=32 -> g=4, Dg=128).
    out = jax.block_until_ready(gate_network(x, weight, bias))
    ref = _reference(x, weight, bias)
    assert out.shape == (B, E)
    assert jnp.allclose(out, ref, atol=1e-4, rtol=1e-4), "mismatch vs reference"
    assert jnp.allclose(jnp.sum(out, axis=1), 1.0, atol=1e-5), "softmax rows != 1"

    # 2) Multi-step reduction over the grouped seq axis (T=64 -> S=16, tt=8 -> 2 steps).
    T2 = 64
    x2 = jax.random.normal(kx2, (B, T2, D), dtype=jnp.float32)
    out2 = jax.block_until_ready(gate_network(x2, weight, bias, tt=8))
    ref2 = _reference(x2, weight, bias)
    assert jnp.allclose(out2, ref2, atol=1e-4, rtol=1e-4), "mismatch (multi-step T)"

    # 3) bf16 streaming with f32 in-kernel accumulation (halves HBM traffic).
    x2_bf16 = x2.astype(jnp.bfloat16)
    out3 = jax.block_until_ready(gate_network(x2_bf16, weight, bias))
    ref3 = _reference(x2_bf16.astype(jnp.float32), weight, bias)
    assert jnp.allclose(out3, ref3, atol=2e-3, rtol=2e-3), "mismatch (bf16 input)"

    print("KERNEL_OK")
</pallas_src>

<mosaic_0001>
module attributes {stable_mosaic.version = 11 : i64} {
  func.func @_gate_kernel(%arg0: i32, %arg1: i32, %arg2: memref<8x4x128xf32, #tpu.memory_space<vmem>>, %arg3: memref<2x128xf32, #tpu.memory_space<vmem>>, %arg4: memref<1x2xf32, #tpu.memory_space<vmem>>, %arg5: memref<8x2xf32, #tpu.memory_space<vmem>>, %arg6: memref<8x128xf32, #tpu.memory_space<vmem>>) attributes {dimension_semantics = [#tpu.dimension_semantics<parallel>, #tpu.dimension_semantics<arbitrary>], iteration_bounds = array<i64: 2, 1>, scalar_prefetch = 0 : i64, scratch_operands = 1 : i64, tpu.core_type = #tpu.core_type<tc>, window_params = [{transform_indices = @transform_0, window_bounds = array<i64: 8, 4, 128>}, {pipeline_mode = #tpu.pipeline_mode<synchronous>, transform_indices = @transform_1, window_bounds = array<i64: 2, 128>}, {pipeline_mode = #tpu.pipeline_mode<synchronous>, transform_indices = @transform_2, window_bounds = array<i64: 1, 2>}, {transform_indices = @transform_3, window_bounds = array<i64: 8, 2>}]} {
    %c0_i32 = arith.constant 0 : i32
    %0 = arith.cmpi eq, %arg1, %c0_i32 : i32
    %1 = arith.extui %0 : i1 to i32
    %c0_i32_0 = arith.constant 0 : i32
    %2 = arith.cmpi ne, %1, %c0_i32_0 : i32
    scf.if %2 {
      %cst_9 = arith.constant 0.000000e+00 : f32
      %11 = vector.broadcast %cst_9 : f32 to vector<8x128xf32>
      %c0_10 = arith.constant 0 : index
      %c0_11 = arith.constant 0 : index
      %12 = vector.load %arg6[%c0_10, %c0_11] : memref<8x128xf32, #tpu.memory_space<vmem>>, vector<8x128xf32>
      tpu.vector_store %arg6[%c0_10, %c0_11], %11 {strides = array<i32>} : memref<8x128xf32, #tpu.memory_space<vmem>>, vector<8x128xf32>,
    } else {
    }
    %c0 = arith.constant 0 : index
    %c0_1 = arith.constant 0 : index
    %3 = vector.load %arg6[%c0, %c0_1] : memref<8x128xf32, #tpu.memory_space<vmem>>, vector<8x128xf32>
    %c0_2 = arith.constant 0 : index
    %c0_3 = arith.constant 0 : index
    %c0_4 = arith.constant 0 : index
    %4 = vector.load %arg2[%c0_2, %c0_3, %c0_4] : memref<8x4x128xf32, #tpu.memory_space<vmem>>, vector<8x4x128xf32>
    %cst = arith.constant dense<0.000000e+00> : vector<8x128xf32>
    %5 = vector.multi_reduction <add>, %4, %cst [1] : vector<8x4x128xf32> to vector<8x128xf32>
    %6 = arith.addf %3, %5 : vector<8x128xf32>
    %c0_5 = arith.constant 0 : index
    %c0_6 = arith.constant 0 : index
    %7 = vector.load %arg6[%c0_5, %c0_6] : memref<8x128xf32, #tpu.memory_space<vmem>>, vector<8x128xf32>
    tpu.vector_store %arg6[%c0_5, %c0_6], %6 {strides = array<i32>} : memref<8x128xf32, #tpu.memory_space<vmem>>, vector<8x128xf32>,
    %c0_i32_7 = arith.constant 0 : i32
    %8 = arith.cmpi eq, %arg1, %c0_i32_7 : i32
    %9 = arith.extui %8 : i1 to i32
    %c0_i32_8 = arith.constant 0 : i32
    %10 = arith.cmpi ne, %9, %c0_i32_8 : i32
    scf.if %10 {
      %c0_9 = arith.constant 0 : index
      %c0_10 = arith.constant 0 : index
      %11 = vector.load %arg6[%c0_9, %c0_10] : memref<8x128xf32, #tpu.memory_space<vmem>>, vector<8x128xf32>
      %c0_11 = arith.constant 0 : index
      %c0_12 = arith.constant 0 : index
      %12 = vector.load %arg3[%c0_11, %c0_12] : memref<2x128xf32, #tpu.memory_space<vmem>>, vector<2x128xf32>
      %cst_13 = arith.constant dense<0.000000e+00> : vector<8x2xf32>
      %13 = tpu.matmul %11, %12, %cst_13 {dimension_numbers = #tpu.dot_dimension_numbers<[1], [1], [0], [0], [0, 0, 1, 0], [], []>} : vector<8x128xf32>, vector<2x128xf32>, vector<8x2xf32> -> vector<8x2xf32>
      %cst_14 = arith.constant 6.250000e-02 : f32
      %14 = vector.broadcast %cst_14 : f32 to vector<8x2xf32>
      %15 = arith.mulf %13, %14 : vector<8x2xf32>
      %c0_15 = arith.constant 0 : index
      %c0_16 = arith.constant 0 : index
      %16 = vector.load %arg4[%c0_15, %c0_16] : memref<1x2xf32, #tpu.memory_space<vmem>>, vector<1x2xf32>
      %17 = vector.broadcast %16 : vector<1x2xf32> to vector<8x2xf32>
      %18 = arith.addf %15, %17 : vector<8x2xf32>
      %cst_17 = arith.constant dense<0xFF800000> : vector<8xf32>
      %19 = vector.multi_reduction <maximumf>, %18, %cst_17 [1] : vector<8x2xf32> to vector<8xf32>
      %20 = vector.shape_cast %19 : vector<8xf32> to vector<8x1xf32>
      %21 = vector.broadcast %20 : vector<8x1xf32> to vector<8x2xf32>
      %22 = arith.subf %18, %21 : vector<8x2xf32>
      %23 = math.exp %22 : vector<8x2xf32>
      %cst_18 = arith.constant dense<0.000000e+00> : vector<8xf32>
      %24 = vector.multi_reduction <add>, %23, %cst_18 [1] : vector<8x2xf32> to vector<8xf32>
      %25 = vector.shape_cast %24 : vector<8xf32> to vector<8x1xf32>
      %26 = vector.broadcast %25 : vector<8x1xf32> to vector<8x2xf32>
      %27 = arith.divf %23, %26 : vector<8x2xf32>
      %c0_19 = arith.constant 0 : index
      %c0_20 = arith.constant 0 : index
      %28 = vector.load %arg5[%c0_19, %c0_20] : memref<8x2xf32, #tpu.memory_space<vmem>>, vector<8x2xf32>
      tpu.vector_store %arg5[%c0_19, %c0_20], %27 {strides = array<i32>} : memref<8x2xf32, #tpu.memory_space<vmem>>, vector<8x2xf32>,
    } else {
    }
    return
  }
  func.func @transform_0(%arg0: i32, %arg1: i32) -> (i32, i32, i32) {
    %c0_i32 = arith.constant 0 : i32
    %c0_i32_0 = arith.constant 0 : i32
    return %arg0, %arg1, %c0_i32 : i32, i32, i32
  }
  func.func @transform_1(%arg0: i32, %arg1: i32) -> (i32, i32) {
    %c0_i32 = arith.constant 0 : i32
    %c0_i32_0 = arith.constant 0 : i32
    %c0_i32_1 = arith.constant 0 : i32
    return %c0_i32, %c0_i32_0 : i32, i32
  }
  func.func @transform_2(%arg0: i32, %arg1: i32) -> (i32, i32) {
    %c0_i32 = arith.constant 0 : i32
    %c0_i32_0 = arith.constant 0 : i32
    %c0_i32_1 = arith.constant 0 : i32
    return %c0_i32, %c0_i32_0 : i32, i32
  }
  func.func @transform_3(%arg0: i32, %arg1: i32) -> (i32, i32) {
    %c0_i32 = arith.constant 0 : i32
    %c0_i32_0 = arith.constant 0 : i32
    return %arg0, %c0_i32 : i32, i32
  }
}

</mosaic_0001>

<bundles_post_ra>
// kernel: tpu_custom_call.1
= control target key start
LH: loop header
LB: loop body
LE: loop exit
PB: predicated region body
PF: predicated region fallthrough
CT: control target
= control target key end

     0   :  { %8 = vsyncpa [#allocation4], 0  ;;  %s807_s0 = inlined_call_operand.hbm [shape: f32[16,4,128], index: 0, kind: input, shape index: {}]   ;;  %s808_s1 = inlined_call_operand.vmem [shape: f32[2,128], index: 1, kind: input, shape index: {}]   ;;  %s809_s2 = inlined_call_operand.vmem [shape: f32[1,2], index: 2, kind: input, shape index: {}]   ;;  %s810_s3 = inlined_call_operand.vmem [shape: f32[16,2], index: 3, kind: output, shape index: {}]  }
   0x1   :  { %10 = vsyncpa [#allocation4 + $0x1], 0  ;;  %s664_s12 = smov 0   ;;  %s666_s13 = smov 0  }
   0x2   :  { %s668_s14 = smov 0   ;;  %s670_s15 = smov 0  }
   0x3   :  { %s672_s16 = smov 0   ;;  %s674_s17 = smov 0  }
   0x4 LB: > { %s473_s18 = sadd.s32 4294967295, %s637_s17   ;;  %s28_s19 = sadd.s32 1, %s633_s16  ;;  %s637_s17 = sphi %s674_s17, %s16_s17   ;;  %s633_s16 = sphi %s672_s16, %s818_s16   ;;  %s629_s15 = sphi %s670_s15, %s817_s15   ;;  %s625_s14 = sphi %s668_s14, %s816_s14   ;;  %s621_s13 = sphi %s666_s13, %s815_s13   ;;  %s617_s12 = sphi %s664_s12, %s814_s12  }
   0x5   : > { %p30_p0 = scmp.ge.s32.totalorder %s28_s19, 2  ;;  %s37_s20 = sadd.s32 1, %s625_s14 }
   0x6   : > { %p44_p1 = scmp.ne.s32.totalorder %s625_s14, %s621_s13  ;;  %p45_p2 = scmp.eq.s32.totalorder %s637_s17, 0 }
   0x7   : > { %s820_s19 = smov (%p30_p0, %s28_s19), 0  ;;  %p50_p4 = scmp.ne.s32.totalorder %s621_s13, %s617_s12 }
   0x8   : > { %p700_p3 = por %p45_p2, %p44_p1  ;;  %s32_s22 = ssub.s32 %s633_s16, %s820_s19 }
   0x9   : > { %p51_p5 = scmp.eq.s32.totalorder %s473_s18, 0  ;;  %p35_p6 = scmp.eq.s32.totalorder %s32_s22, 0 }
   0xa   : > { %p500_p8 = scmp.lt.s32.totalorder %s637_s17, 2  ;;  %s148_s25 = sand.u32 1, %s625_s14  }
   0xb   : > { %p707_p7 = por %p51_p5, %p50_p4  ;;  %s486_s26 = sshll.u32 %s633_s16, 9 }
   0xc   : > { %s713_s24 = scalar_select %p35_p6, %s625_s14, %s37_s20  }
   0xd   : > { %s477_s27 = sshll.u32 %s148_s25, 5  ;;  %s720_s30 = scalar_lea.hbm %s807_s0, %s486_s26 }
   0xe   : > { %s152_s4 = scalar_lea.vmem [#allocation3], %s477_s27  ;;  %p724_p9 = pnand %p500_p8, %p700_p3 }
   0xf   : > { %s160_s5 = sshll.u32 %s152_s4, 4  ;;  %s730_s7 = scalar_lea.sflag [#allocation4], %s148_s25  ;;  %s728_s5 = int_to_ptr.vmem [resolvable:$true] %s160_s5 }
  0x10   : > { %s557_s8 = scalar_lea.hbm %s720_s30, 512  ;;  %p559_p11 = pneg %p724_p9 }
  0x11   : > { %p558_p10 = scmp.ne.s32.totalorder %s720_s30, %s557_s8  ;;  %s562_s11 = scalar_lea.hbm %s807_s0, 1024 }
  0x12   : > { %p563_p0 = scmp.lt.u32.totalorder %s720_s30, %s807_s0  ;;  %p564_p1 = scmp.lt.u32.totalorder %s562_s11, %s557_s8 }
  0x13   : > { %p560_p12 = pnand %p559_p11, %p558_p10  ;;  %p566_p3 = scmp.lt.u32.totalorder %s557_s8, %s720_s30 }
  0x14   : > { %p565_p2 = por %p564_p1, %p563_p0 }
  0x15   : > { %p561_p13 = pneg %p560_p12 }
  0x16   : > { %p567_p4 = por %p566_p3, %p565_p2 }
  0x18   : > { %p568_p5 = pnand %p567_p4, %p561_p13 }
  0x1a   : > { %571 = shalt.err (!%p568_p5)
}
  0x1b   : > { %s572_s20 = scalar_lea.vmem %s728_s5, 512  ;;  %s639_s21 = smov [#allocation3]  }
  0x1c   : > { %p573_p6 = scmp.ne.s32.totalorder %s728_s5, %s572_s20  ;;  %s577_s22 = sshll.u32 %s639_s21, 4  ;;  %s578_s22 = int_to_ptr.vmem [resolvable:$false] %s577_s22 }
  0x1d   : > { %s579_s25 = scalar_lea.vmem %s578_s22, 1024  ;;  %p580_p12 = scmp.lt.s32.totalorder %s728_s5, %s578_s22 }
  0x1e   : > { %p575_p8 = pnand %p573_p6, %p559_p11  ;;  %p581_p0 = scmp.lt.s32.totalorder %s579_s25, %s572_s20 }
  0x20   : > { %p576_p10 = pneg %p575_p8  ;;  %p582_p1 = por %p581_p0, %p580_p12 }
  0x22   : > { %p583_p2 = pnand %p582_p1, %p576_p10 }
  0x24   : > { %586 = shalt.err (!%p583_p2)
}
  0x25   : > { %s640_s26 = smov 64   ;;  %s641_s27 = smov 4  }
  0x26   : > { %499 = dma.hbm_to_vmem [thread:$0]  (!%p724_p9), %s720_s30, 512, %s728_s5, %s730_s7, %s640_s26, %s640_s26, %s641_s27  }
  0x27   : > { %p480_p11 = scmp.ge.s32.totalorder %s637_s17, 1  ;;  %p168_p13 = scmp.lt.s32.totalorder %s637_s17, 3 }
  0x29   : > { %p169_p3 = pnand %p480_p11, %p168_p13 }
  0x2a   : > { %s174_s28 = sand.u32 (!%p169_p3), 1, %s621_s13  }
  0x2b   : > { %172 = sbr.rel (%p169_p3) target bundleno = 606 (0x25e), region = 32  ;;  %s481_s29 = sshll.u32 (!%p169_p3), %s174_s28, 5 }
  0x2c   : > { %s175_s4 = scalar_lea.sflag (!%p169_p3), [#allocation4], %s174_s28  ;;  %s178_s8 = scalar_lea.vmem (!%p169_p3), [#allocation3], %s481_s29 }
  0x32   : > { %612 = dma.done.wait (%p707_p7), %s175_s4, 512  }
  0x33   : > { %614 = vsyncadd (%p707_p7), %s175_s4, 4294966784  ;;  %v642_v0 = vmov 0.0   ;;  %vm643_vm0 = vmmov 0   ;;  %vm219_vm1 = vcmask 1043456   ;;  %v305_v1 = vld [vmem:[%s808_s1] sm:$0x3] }
  0x34   : > { %489 = vmatprep.subr.mxu0 %v642_v0  ;;  %491 = vmatprep.mubr.msk.f32.mxu0 %vm643_vm0, %v642_v0  ;;  %v211_v2 = vld [vmem:[%s178_s8] sm:$0xf]  ;;  %v212_v3 = vld [vmem:[%s178_s8 + $0x4] sm:$0xf]  ;;  %v213_v4 = vld [vmem:[%s178_s8 + $0x8] sm:$0xf] }
  0x35   : > { %490 = vmatpush3.xpose.msra.mxu0 %v305_v1  ;;  %v214_v5 = vld [vmem:[%s178_s8 + $0xc] sm:$0xf]  ;;  %v215_v6 = vld [vmem:[%s178_s8 + $0x10] sm:$0xf]  ;;  %v216_v7 = vld [vmem:[%s178_s8 + $0x14] sm:$0xf] }
  0x36   : > { %v217_v8 = vld [vmem:[%s178_s8 + $0x18] sm:$0xf]  ;;  %v218_v9 = vld [vmem:[%s178_s8 + $0x1c] sm:$0xf]  ;;  %v220_v10 = vsel %vm219_vm1, %v211_v2, 0.0  ;;  %v227_v11 = vsel %vm219_vm1, %v212_v3, 0.0 }
  0x37   : > { %v234_v12 = vsel %vm219_vm1, %v213_v4, 0.0  ;;  %v241_v13 = vsel %vm219_vm1, %v214_v5, 0.0  ;;  %v221_v14 = vrot.slane %v220_v10, 4  ;;  %v228_v15 = vrot.slane %v227_v11, 4  ;;  %p201_p7 = scmp.lt.s32.totalorder %s629_s15, 1 }
  0x38   : > { %v235_v16 = vrot.slane %v234_v12, 4  ;;  %v242_v17 = vrot.slane %v241_v13, 4  ;;  %v248_v18 = vsel %vm219_vm1, %v215_v6, 0.0  ;;  %v255_v19 = vsel %vm219_vm1, %v216_v7, 0.0 }
  0x39   : > { %v262_v20 = vsel %vm219_vm1, %v217_v8, 0.0  ;;  %v269_v21 = vsel %vm219_vm1, %v218_v9, 0.0  ;;  %vm284_vm2 = vcmask 1041409   ;;  %v222_v22 = vadd.f32 %v221_v14, %v220_v10  ;;  %v483_v10 = vld [vmem:[%s809_s2] ss:$0 sm:$0xff]  ;;  %s822_s15 = smov (!%p201_p7, %s629_s15), 1 }
  0x3a   : > { %v229_v23 = vadd.f32 %v228_v15, %v227_v11  ;;  %v236_v24 = vadd.f32 %v235_v16, %v234_v12  ;;  %v243_v25 = vadd.f32 %v242_v17, %v241_v13  ;;  %v249_v26 = vrot.slane %v248_v18, 4  ;;  %s482_s7 = sshll.u32 %s822_s15, 3 }
  0x3b   : > { %v256_v27 = vrot.slane %v255_v19, 4  ;;  %v263_v28 = vrot.slane %v262_v20, 4  ;;  %v270_v29 = vrot.slane %v269_v21, 4  ;;  %vm286_vm3 = vcmask 1042434   ;;  %s204_s11 = scalar_lea.vmem %s810_s3, %s482_s7 }
  0x3c   : > { %v223_v30 = vrot.slane %v222_v22, 2  ;;  %v230_v31 = vrot.slane %v229_v23, 2  ;;  %v237_v32 = vrot.slane %v236_v24, 2  ;;  %v244_v33 = vrot.slane %v243_v25, 2 }
  0x3d   : > { %v250_v34 = vadd.f32 %v249_v26, %v248_v18  ;;  %v257_v35 = vadd.f32 %v256_v27, %v255_v19  ;;  %v264_v36 = vadd.f32 %v263_v28, %v262_v20  ;;  %v271_v37 = vadd.f32 %v270_v29, %v269_v21 }
  0x3e   : > { %v224_v38 = vadd.f32 %v223_v30, %v222_v22  ;;  %v231_v39 = vadd.f32 %v230_v31, %v229_v23  ;;  %v238_v40 = vadd.f32 %v237_v32, %v236_v24  ;;  %v245_v41 = vadd.f32 %v244_v33, %v243_v25 }
  0x3f   : > { %v251_v42 = vrot.slane %v250_v34, 2  ;;  %v258_v43 = vrot.slane %v257_v35, 2  ;;  %v265_v44 = vrot.slane %v264_v36, 2  ;;  %v272_v45 = vrot.slane %v271_v37, 2 }
  0x40   : > { %v225_v46 = vrot.slane %v224_v38, 1  ;;  %v232_v47 = vrot.slane %v231_v39, 1  ;;  %v239_v48 = vrot.slane %v238_v40, 1  ;;  %v246_v49 = vrot.slane %v245_v41, 1 }
  0x41   : > { %v252_v50 = vadd.f32 %v251_v42, %v250_v34  ;;  %v259_v51 = vadd.f32 %v258_v43, %v257_v35  ;;  %v266_v52 = vadd.f32 %v265_v44, %v264_v36  ;;  %v273_v53 = vadd.f32 %v272_v45, %v271_v37 }
  0x42   : > { %v226_v54 = vadd.f32 %v225_v46, %v224_v38  ;;  %v233_v55 = vadd.f32 %v232_v47, %v231_v39  ;;  %v240_v56 = vadd.f32 %v239_v48, %v238_v40  ;;  %v247_v57 = vadd.f32 %v246_v49, %v245_v41 }
  0x43   : > { %v253_v58 = vrot.slane %v252_v50, 1  ;;  %v260_v59 = vrot.slane %v259_v51, 1  ;;  %v267_v60 = vrot.slane %v266_v52, 1  ;;  %v274_v61 = vrot.slane %v273_v53, 1 }
  0x44   : > { %v285_v62 = vsel %vm284_vm2, %v233_v55, %v226_v54  ;;  %vm288_vm4 = vcmask 1043459   ;;  %vm290_vm5 = vcmask 1044484   ;;  %vm292_vm6 = vcmask 1045509  }
  0x45   : > { %v254_v63 = vadd.f32 %v253_v58, %v252_v50  ;;  %v261_v0 = vadd.f32 %v260_v59, %v259_v51  ;;  %v268_v1 = vadd.f32 %v267_v60, %v266_v52  ;;  %v287_v2 = vsel %vm286_vm3, %v240_v56, %v285_v62 }
  0x46   : > { %v275_v3 = vadd.f32 %v274_v61, %v273_v53  ;;  %v289_v4 = vsel %vm288_vm4, %v247_v57, %v287_v2  ;;  %vm294_vm7 = vcmask 1046534   ;;  %vm296_vm8 = vcmask 1047559  }
  0x47   : > { %v291_v5 = vsel %vm290_vm5, %v254_v63, %v289_v4  ;;  %vm385_vm9 = vcmask 15360  }
  0x48   : > { %v293_v6 = vsel %vm292_vm6, %v261_v0, %v291_v5 }
  0x49   : > { %v295_v7 = vsel %vm294_vm7, %v268_v1, %v293_v6 }
  0x4a   : > { %v297_v8 = vsel %vm296_vm8, %v275_v3, %v295_v7 }
  0x4b   : > { %492 = vmatmul.mubr.f32.vlgmr.msra.gmra.mrb[0].mxu0 %v297_v8 }
 0x11e   : > { %v372_v9 = vpop.f32.mrb[0].mxu0 }
 0x11f   : > { %v376_v11 = vmul.f32 0.0625, %v372_v9  ;;  %v493_v12 = vpop.f32.mrb[1].mxu0 }
 0x121   : > { %v384_v13 = vadd.f32 %v483_v10, %v376_v11 }
 0x123   : > { %v386_v14 = vsel %vm385_vm9, %v384_v13, -inf }
 0x124   : > { %387 = vmax.xlane.f32.xlu0 %v386_v14 }
 0x1b1   : > { %v388_v15 = vpop.xlane.xlu0 %387 }
 0x1b2   : > { %v389_v16 = vsub.f32 %v384_v13, %v388_v15 }
 0x1b4   : > { %v390_v17 = vmul.f32 1.442695, %v389_v16 }
 0x1b6   : > { %553 = vpow2.f32 %v390_v17 }
 0x1c0   : > { %v554_v18 = vpop.eup %553 }
 0x1c1   : > { %v392_v19 = vsel %vm385_vm9, %v554_v18, 0.0 }
 0x1c2   : > { %393 = vadd.xlane.f32.xlu0 %v392_v19 }
 0x24f   : > { %v394_v20 = vpop.xlane.xlu0 %393 }
 0x250   : > { %555 = vrcp.f32 %v394_v20 }
 0x25a   : > { %v556_v21 = vpop.eup %555 }
 0x25b   : > { %v396_v22 = vmul.f32 %v556_v21, %v554_v18 }
 0x25d   : > { %397 = vst.msk [vmem:[%s204_s11] sm:$0xff] %vm385_vm9, %v396_v22 }
 0x25e PF: > { %s16_s17 = sadd.s32 1, %s637_s17   ;;  %s814_s12 = smov %s621_s13 }
 0x25f   : > { %p13_p9 = scmp.ge.s32.totalorder %s16_s17, 4   ;;  %s815_s13 = smov %s625_s14 }
 0x260   : > { %s816_s14 = smov %s713_s24  ;;  %s817_s15 = smov %s633_s16 }
 0x261   : > { %s818_s16 = smov %s820_s19  ;;  %15 = sbr.rel (!%p13_p9) target bundleno = 4 (0x4), region = 80 }
 0x268   :  { %417 = vsyncpa [#allocation4], 1 }
 0x269   :  { %419 = vsyncpa [#allocation4 + $0x1], 1 }

</bundles_post_ra>
